<compile_context>
chip_gen: v5e
topology: v5e:2x2
jax: 0.10.0
libtpu: 0.0.40
codegen_flags: <defaults>
</compile_context>

<pallas_src>
import functools

import jax
import jax.numpy as jnp
from jax.experimental import pallas as pl
from jax.experimental.pallas import tpu as pltpu


def _round_up(n, m):
    return ((n + m - 1) // m) * m


def _transition_kernel(x_ref, w1_ref, b1_ref, w2_ref, b2_ref, w3_ref, b3_ref,
                       out_ref, *, state_dim):
    x = x_ref[...]                                            # (TB, S+A)
    state = x[:, :state_dim]                                  # residual source

    # fc1 + ReLU (single dot over the concatenated input)
    h1 = jnp.dot(x, w1_ref[...], preferred_element_type=jnp.float32) + b1_ref[...]
    h1 = jnp.maximum(h1, 0.0)                                 # (TB, H1)

    # fc2 + ReLU
    h2 = jnp.dot(h1, w2_ref[...], preferred_element_type=jnp.float32) + b2_ref[...]
    h2 = jnp.maximum(h2, 0.0)                                 # (TB, H2)

    # fc3 -> delta, residual add
    delta = jnp.dot(h2, w3_ref[...], preferred_element_type=jnp.float32) + b3_ref[...]
    out_ref[...] = (state + delta).astype(out_ref.dtype)      # (TB, S)


def transition_model_forward(state, act, params, *, block_batch=256):
    """TransitionModel forward pass as a batch-tiled Pallas kernel.

    state : (B, state_dim) f32
    act   : (B, act_dim)   f32
    params: dict with w1 (S+A, H1), b1 (1, H1), w2 (H1, H2), b2 (1, H2),
                      w3 (H2, S),  b3 (1, S)     (weights stored (in, out))
    """
    B, S = state.shape
    A = act.shape[1]
    K = S + A
    H1 = params["w1"].shape[1]
    H2 = params["w2"].shape[1]

    # Fuse the concat wrapper-side -> one K=(S+A) matmul inside the kernel.
    x = jnp.concatenate([state, act], axis=1)                 # (B, S+A)

    # Batch tile: multiple of 8 sublanes, capped so double-buffered activation
    # tiles stay well inside VMEM on every generation (incl. v7x's 64 MiB).
    tb = min(block_batch, _round_up(B, 8))
    b_pad = _round_up(B, tb)
    if b_pad != B:
        x = jnp.pad(x, ((0, b_pad - B), (0, 0)))
    grid = (b_pad // tb,)

    const = lambda i: (0, 0)   # same block every step -> weights stay VMEM-resident
    in_specs = [
        pl.BlockSpec((tb, K), lambda i: (i, 0)),              # x batch tile
        pl.BlockSpec((K, H1), const),                         # w1
        pl.BlockSpec((1, H1), const),                         # b1
        pl.BlockSpec((H1, H2), const),                        # w2
        pl.BlockSpec((1, H2), const),                         # b2
        pl.BlockSpec((H2, S), const),                         # w3
        pl.BlockSpec((1, S), const),                          # b3
    ]
    out_spec = pl.BlockSpec((tb, S), lambda i: (i, 0))

    flops = 2 * b_pad * (K * H1 + H1 * H2 + H2 * S)
    bytes_accessed = 4 * (b_pad * K + K * H1 + H1 + H1 * H2 + H2
                          + H2 * S + S + b_pad * S)

    # TODO(synk): when used inside a rollout loop, alias the output onto the
    # state buffer (input_output_aliases) and fuse several timesteps per call.
    out = pl.pallas_call(
        functools.partial(_transition_kernel, state_dim=S),
        out_shape=jax.ShapeDtypeStruct((b_pad, S), jnp.float32),
        grid=grid,
        in_specs=in_specs,
        out_specs=out_spec,
        compiler_params=pltpu.CompilerParams(
            dimension_semantics=("parallel",)),
        cost_estimate=pl.CostEstimate(
            flops=flops, transcendentals=0, bytes_accessed=bytes_accessed),
    )(x, params["w1"], params["b1"], params["w2"], params["b2"],
      params["w3"], params["b3"])

    return out[:B] if b_pad != B else out


def init_params(key, state_dim, act_dim, hidden1, hidden2):
    """Deterministic init mimicking PyTorch nn.Linear default (U[-1/sqrt(fan_in), +])."""
    ks = jax.random.split(key, 6)

    def lin(kw, kb, fan_in, fan_out):
        bound = 1.0 / (fan_in ** 0.5)
        # stored as (in, out) so the kernel does x @ W
        w = jax.random.uniform(kw, (fan_in, fan_out), jnp.float32, -bound, bound)
        b = jax.random.uniform(kb, (1, fan_out), jnp.float32, -bound, bound)
        return w, b

    w1, b1 = lin(ks[0], ks[1], state_dim + act_dim, hidden1)
    w2, b2 = lin(ks[2], ks[3], hidden1, hidden2)
    w3, b3 = lin(ks[4], ks[5], hidden2, state_dim)
    return {"w1": w1, "b1": b1, "w2": w2, "b2": b2, "w3": w3, "b3": b3}


def reference_forward(state, act, params):
    """Pure-JAX reference for correctness check."""
    x = jnp.concatenate([state, act], axis=1)
    h1 = jax.nn.relu(x @ params["w1"] + params["b1"])
    h2 = jax.nn.relu(h1 @ params["w2"] + params["b2"])
    delta = h2 @ params["w3"] + params["b3"]
    return state + delta


if __name__ == "__main__":
    # Small shapes consistent with the module's forward.
    batch, state_dim, act_dim = 8, 16, 4
    hidden1, hidden2 = 32, 32

    key = jax.random.PRNGKey(0)
    k_state, k_act, k_params = jax.random.split(key, 3)

    state = jax.random.normal(k_state, (batch, state_dim), jnp.float32)
    act = jax.random.normal(k_act, (batch, act_dim), jnp.float32)
    params = init_params(k_params, state_dim, act_dim, hidden1, hidden2)

    out = transition_model_forward(state, act, params)
    out = jax.block_until_ready(out)

    ref = reference_forward(state, act, params)
    assert out.shape == (batch, state_dim)
    assert jnp.allclose(out, ref, atol=1e-5, rtol=1e-5), "mismatch vs JAX reference"

    print("KERNEL_OK")
</pallas_src>

<mosaic_0001>
module attributes {stable_mosaic.version = 11 : i64} {
  func.func @_transition_kernel(%arg0: i32, %arg1: memref<8x20xf32, #tpu.memory_space<vmem>>, %arg2: memref<20x32xf32, #tpu.memory_space<vmem>>, %arg3: memref<1x32xf32, #tpu.memory_space<vmem>>, %arg4: memref<32x32xf32, #tpu.memory_space<vmem>>, %arg5: memref<1x32xf32, #tpu.memory_space<vmem>>, %arg6: memref<32x16xf32, #tpu.memory_space<vmem>>, %arg7: memref<1x16xf32, #tpu.memory_space<vmem>>, %arg8: memref<8x16xf32, #tpu.memory_space<vmem>>) attributes {dimension_semantics = [#tpu.dimension_semantics<parallel>], iteration_bounds = array<i64: 1>, scalar_prefetch = 0 : i64, scratch_operands = 0 : i64, tpu.core_type = #tpu.core_type<tc>, window_params = [{transform_indices = @transform_0, window_bounds = array<i64: 8, 20>}, {pipeline_mode = #tpu.pipeline_mode<synchronous>, transform_indices = @transform_1, window_bounds = array<i64: 20, 32>}, {pipeline_mode = #tpu.pipeline_mode<synchronous>, transform_indices = @transform_2, window_bounds = array<i64: 1, 32>}, {pipeline_mode = #tpu.pipeline_mode<synchronous>, transform_indices = @transform_3, window_bounds = array<i64: 32, 32>}, {pipeline_mode = #tpu.pipeline_mode<synchronous>, transform_indices = @transform_4, window_bounds = array<i64: 1, 32>}, {pipeline_mode = #tpu.pipeline_mode<synchronous>, transform_indices = @transform_5, window_bounds = array<i64: 32, 16>}, {pipeline_mode = #tpu.pipeline_mode<synchronous>, transform_indices = @transform_6, window_bounds = array<i64: 1, 16>}, {transform_indices = @transform_7, window_bounds = array<i64: 8, 16>}]} {
    %c0 = arith.constant 0 : index
    %c0_0 = arith.constant 0 : index
    %0 = vector.load %arg1[%c0, %c0_0] : memref<8x20xf32, #tpu.memory_space<vmem>>, vector<8x20xf32>
    %1 = vector.extract_strided_slice %0 {offsets = [0, 0], sizes = [8, 16], strides = [1, 1]} : vector<8x20xf32> to vector<8x16xf32>
    %c0_1 = arith.constant 0 : index
    %c0_2 = arith.constant 0 : index
    %2 = vector.load %arg2[%c0_1, %c0_2] : memref<20x32xf32, #tpu.memory_space<vmem>>, vector<20x32xf32>
    %cst = arith.constant dense<0.000000e+00> : vector<8x32xf32>
    %3 = tpu.matmul %0, %2, %cst {dimension_numbers = #tpu.dot_dimension_numbers<[1], [0], [0], [1], [0, 0, 1, 1], [], []>} : vector<8x20xf32>, vector<20x32xf32>, vector<8x32xf32> -> vector<8x32xf32>
    %c0_3 = arith.constant 0 : index
    %c0_4 = arith.constant 0 : index
    %4 = vector.load %arg3[%c0_3, %c0_4] : memref<1x32xf32, #tpu.memory_space<vmem>>, vector<1x32xf32>
    %5 = vector.broadcast %4 : vector<1x32xf32> to vector<8x32xf32>
    %6 = arith.addf %3, %5 : vector<8x32xf32>
    %cst_5 = arith.constant 0.000000e+00 : f32
    %7 = vector.broadcast %cst_5 : f32 to vector<8x32xf32>
    %8 = arith.maximumf %6, %7 : vector<8x32xf32>
    %c0_6 = arith.constant 0 : index
    %c0_7 = arith.constant 0 : index
    %9 = vector.load %arg4[%c0_6, %c0_7] : memref<32x32xf32, #tpu.memory_space<vmem>>, vector<32x32xf32>
    %cst_8 = arith.constant dense<0.000000e+00> : vector<8x32xf32>
    %10 = tpu.matmul %8, %9, %cst_8 {dimension_numbers = #tpu.dot_dimension_numbers<[1], [0], [0], [1], [0, 0, 1, 1], [], []>} : vector<8x32xf32>, vector<32x32xf32>, vector<8x32xf32> -> vector<8x32xf32>
    %c0_9 = arith.constant 0 : index
    %c0_10 = arith.constant 0 : index
    %11 = vector.load %arg5[%c0_9, %c0_10] : memref<1x32xf32, #tpu.memory_space<vmem>>, vector<1x32xf32>
    %12 = vector.broadcast %11 : vector<1x32xf32> to vector<8x32xf32>
    %13 = arith.addf %10, %12 : vector<8x32xf32>
    %cst_11 = arith.constant 0.000000e+00 : f32
    %14 = vector.broadcast %cst_11 : f32 to vector<8x32xf32>
    %15 = arith.maximumf %13, %14 : vector<8x32xf32>
    %c0_12 = arith.constant 0 : index
    %c0_13 = arith.constant 0 : index
    %16 = vector.load %arg6[%c0_12, %c0_13] : memref<32x16xf32, #tpu.memory_space<vmem>>, vector<32x16xf32>
    %cst_14 = arith.constant dense<0.000000e+00> : vector<8x16xf32>
    %17 = tpu.matmul %15, %16, %cst_14 {dimension_numbers = #tpu.dot_dimension_numbers<[1], [0], [0], [1], [0, 0, 1, 1], [], []>} : vector<8x32xf32>, vector<32x16xf32>, vector<8x16xf32> -> vector<8x16xf32>
    %c0_15 = arith.constant 0 : index
    %c0_16 = arith.constant 0 : index
    %18 = vector.load %arg7[%c0_15, %c0_16] : memref<1x16xf32, #tpu.memory_space<vmem>>, vector<1x16xf32>
    %19 = vector.broadcast %18 : vector<1x16xf32> to vector<8x16xf32>
    %20 = arith.addf %17, %19 : vector<8x16xf32>
    %21 = arith.addf %1, %20 : vector<8x16xf32>
    %c0_17 = arith.constant 0 : index
    %c0_18 = arith.constant 0 : index
    %22 = vector.load %arg8[%c0_17, %c0_18] : memref<8x16xf32, #tpu.memory_space<vmem>>, vector<8x16xf32>
    tpu.vector_store %arg8[%c0_17, %c0_18], %21 {strides = array<i32>} : memref<8x16xf32, #tpu.memory_space<vmem>>, vector<8x16xf32>,
    return
  }
  func.func @transform_0(%arg0: i32) -> (i32, i32) {
    %c0_i32 = arith.constant 0 : i32
    %c0_i32_0 = arith.constant 0 : i32
    return %arg0, %c0_i32 : i32, i32
  }
  func.func @transform_1(%arg0: i32) -> (i32, i32) {
    %c0_i32 = arith.constant 0 : i32
    %c0_i32_0 = arith.constant 0 : i32
    %c0_i32_1 = arith.constant 0 : i32
    return %c0_i32, %c0_i32_0 : i32, i32
  }
  func.func @transform_2(%arg0: i32) -> (i32, i32) {
    %c0_i32 = arith.constant 0 : i32
    %c0_i32_0 = arith.constant 0 : i32
    %c0_i32_1 = arith.constant 0 : i32
    return %c0_i32, %c0_i32_0 : i32, i32
  }
  func.func @transform_3(%arg0: i32) -> (i32, i32) {
    %c0_i32 = arith.constant 0 : i32
    %c0_i32_0 = arith.constant 0 : i32
    %c0_i32_1 = arith.constant 0 : i32
    return %c0_i32, %c0_i32_0 : i32, i32
  }
  func.func @transform_4(%arg0: i32) -> (i32, i32) {
    %c0_i32 = arith.constant 0 : i32
    %c0_i32_0 = arith.constant 0 : i32
    %c0_i32_1 = arith.constant 0 : i32
    return %c0_i32, %c0_i32_0 : i32, i32
  }
  func.func @transform_5(%arg0: i32) -> (i32, i32) {
    %c0_i32 = arith.constant 0 : i32
    %c0_i32_0 = arith.constant 0 : i32
    %c0_i32_1 = arith.constant 0 : i32
    return %c0_i32, %c0_i32_0 : i32, i32
  }
  func.func @transform_6(%arg0: i32) -> (i32, i32) {
    %c0_i32 = arith.constant 0 : i32
    %c0_i32_0 = arith.constant 0 : i32
    %c0_i32_1 = arith.constant 0 : i32
    return %c0_i32, %c0_i32_0 : i32, i32
  }
  func.func @transform_7(%arg0: i32) -> (i32, i32) {
    %c0_i32 = arith.constant 0 : i32
    %c0_i32_0 = arith.constant 0 : i32
    return %arg0, %c0_i32 : i32, i32
  }
}

</mosaic_0001>

<bundles_post_ra>
// kernel: tpu_custom_call.1
= control target key start
LH: loop header
LB: loop body
LE: loop exit
PB: predicated region body
PF: predicated region fallthrough
CT: control target
= control target key end

     0   :  { %12 = vsyncpa [#allocation3], 0  ;;  %s313_s0 = inlined_call_operand.vmem [shape: f32[8,20], index: 0, kind: input, shape index: {}]   ;;  %s314_s1 = inlined_call_operand.hbm [shape: f32[20,32], index: 1, kind: input, shape index: {}]   ;;  %s315_s2 = inlined_call_operand.vmem [shape: f32[1,32], index: 2, kind: input, shape index: {}]   ;;  %s316_s3 = inlined_call_operand.vmem [shape: f32[32,32], index: 3, kind: input, shape index: {}]   ;;  %s317_s4 = inlined_call_operand.vmem [shape: f32[1,32], index: 4, kind: input, shape index: {}]   ;;  %s318_s5 = inlined_call_operand.vmem [shape: f32[32,16], index: 5, kind: input, shape index: {}]   ;;  %s319_s6 = inlined_call_operand.vmem [shape: f32[1,16], index: 6, kind: input, shape index: {}]   ;;  %s320_s7 = inlined_call_operand.hbm [shape: f32[8,16], index: 7, kind: output, shape index: {}]  }
   0x1   :  { %13 = vsyncpa [#allocation4], 0  ;;  %s20_s26 = sshll.u32 %s314_s1, 4  ;;  %s227_s27 = smov [#allocation2]   ;;  %s21_s26 = int_to_ptr.hbm [resolvable:$true] %s20_s26 }
   0x2   :  { %s22_s28 = sshll.u32 %s227_s27, 4  ;;  %s228_s29 = smov 128   ;;  %s23_s28 = int_to_ptr.vmem [resolvable:$true] %s22_s28 }
   0x3   :  { %s229_s30 = smov 8  }
   0x4   :  { %28 = dma.hbm_to_vmem [thread:$0]  %s21_s26, 384, %s23_s28, [#allocation3], %s228_s29, %s228_s29, %s229_s30  }
   0x5   :  { %223 = dma.done.wait [#allocation3], 384  }
   0x6   :  { %224 = vsyncadd [#allocation3], 4294966912  ;;  %vm55_vm0 = vcmask 1043456   ;;  %v46_v0 = vld [vmem:[#allocation2 + $0x10] sm:$0xf]  ;;  %v45_v1 = vld [vmem:[#allocation2 + $0x8] sm:$0xff] }
   0x7   :  { %164 = vmatpush.msk.msra.mxu0 %vm55_vm0, %v46_v0  ;;  %v83_v2 = vld [vmem:[%s316_s3 + $0x18] sm:$0xff]  ;;  %v44_v3 = vld [vmem:[#allocation2] sm:$0xff]  ;;  %vm51_vm1 = vcmask 162816   ;;  %v82_v5 = vld [vmem:[%s316_s3 + $0x10] sm:$0xff]  ;;  %vm88_vm2 = vcmask 261120   ;;  %s230_s28 = smov [#allocation5]  }
   0x8   :  { %104 = vmatpush.msra.mxu1 %v83_v2  ;;  %v43_v4 = vld [vmem:[%s313_s0] sm:$0xff]  ;;  %v81_v6 = vld [vmem:[%s316_s3 + $0x8] sm:$0xff]  ;;  %v116_v8 = vld [vmem:[%s318_s5 + $0x18] sm:$0xff]  ;;  %s152_s29 = sshll.u32 %s230_s28, 4  ;;  %vm145_vm3 = vcmask 130048   ;;  %s153_s29 = int_to_ptr.vmem [resolvable:$true] %s152_s29 }
   0x9   :  { %73 = vmatpush.msra.mxu0 %v45_v1  ;;  %v80_v7 = vld [vmem:[%s316_s3] sm:$0xff]  ;;  %136 = vmatpush.msra.mxu2 %v116_v8  ;;  %v115_v13 = vld [vmem:[%s318_s5 + $0x10] sm:$0xff]  ;;  %v114_v14 = vld [vmem:[%s318_s5 + $0x8] sm:$0xff] }
   0xa   :  { %105 = vmatpush.msra.mxu1 %v82_v5  ;;  %v172_v9 = vld [vmem:[%s315_s2] ss:$0 sm:$0xff] }
   0xb   :  { %74 = vmatpush.msra.mxu0 %v44_v3  ;;  %137 = vmatpush.msra.mxu2 %v115_v13  ;;  %v113_v15 = vld [vmem:[%s318_s5] sm:$0xff]  ;;  %s154_s5 = sshll.u32 %s320_s7, 4  ;;  %s155_s5 = int_to_ptr.hbm [resolvable:$true] %s154_s5 }
   0xc   :  { %165 = vmatmul.msk.f32.vlgmr.msra.gmra.mxu0 %vm51_vm1, %v43_v4  ;;  %106 = vmatpush.msra.mxu1 %v81_v6  ;;  %v173_v16 = vld [vmem:[%s317_s4] ss:$0 sm:$0xff] }
   0xd   :  { %138 = vmatpush.msra.mxu2 %v114_v14  ;;  %v174_v20 = vld [vmem:[%s319_s6] ss:$0 sm:$0xff] }
   0xe   :  { %107 = vmatpush.msra.mxu1 %v80_v7 }
   0xf   :  { %139 = vmatpush.msra.mxu2 %v113_v15 }
  0x89   :  { %v76_v10 = vpop.f32.mrf.mxu0 }
  0x8a   :  { %v77_v11 = vadd.f32 %v172_v9, %v76_v10 }
  0x8c   :  { %v79_v12 = vmax.f32 %v77_v11, 0.0 }
  0x8e   :  { %166 = vmatmul.msk.f32.vlgmr.msra.gmra.mxu1 %vm88_vm2, %v79_v12 }
 0x10b   :  { %v109_v17 = vpop.f32.mrf.mxu1 }
 0x10c   :  { %v110_v18 = vadd.f32 %v173_v16, %v109_v17 }
 0x10e   :  { %v112_v19 = vmax.f32 %v110_v18, 0.0 }
 0x110   :  { %167 = vmatmul.msk.f32.vlgmr.msra.gmra.mxu2 %vm88_vm2, %v112_v19 }
 0x193   :  { %v141_v21 = vpop.f32.mrf.mxu2 }
 0x194   :  { %v142_v22 = vadd.f32 %v174_v20, %v141_v21 }
 0x196   :  { %v144_v23 = vadd.f32 %v142_v22, %v43_v4 }
 0x198   :  { %146 = vst.msk [vmem:[#allocation5] sm:$0xff] %vm145_vm3, %v144_v23 }
 0x199   :  { %157 = dma.vmem_to_hbm [thread:$0]  %s153_s29, 128, %s155_s5, [#allocation4]  }
 0x19a   :  { %225 = dma.done.wait [#allocation4], 128  }
 0x19b   :  { %226 = vsyncadd [#allocation4], 4294967168 }
 0x19c   :  { %162 = vsyncpa [#allocation3], 1 }
 0x19d   :  { %163 = vsyncpa [#allocation4], 1 }

</bundles_post_ra>
